<compile_context>
chip_gen: v7x
topology: tpu7x:2x2x1
jax: 0.10.0
libtpu: 0.0.40
codegen_flags: <defaults>
</compile_context>

<pallas_src>
import jax
import jax.numpy as jnp
from jax.experimental import pallas as pl
from jax.experimental.pallas import tpu as pltpu


# ----------------------------------------------------------------------------
# helpers
# ----------------------------------------------------------------------------
def _round_up(x, m):
    return (x + m - 1) // m * m


def _vmem_capacity_bytes():
    try:
        return int(pltpu.get_tpu_info().vmem_capacity_bytes)
    except Exception:
        # Conservative default (v7x per-core VMEM) when the query is unavailable.
        return 64 * 1024 * 1024


def _choose_tile_m(k, c_out_pad, budget_bytes, in_bytes=2, acc_bytes=4):
    """Largest row-tile (prefer 128-512) whose double-buffered blocks fit VMEM."""
    k_pad = _round_up(max(k, 1), 128)  # lanes are padded to 128 in VMEM anyway
    for tm in (512, 384, 256, 128, 64, 32, 16, 8):
        need = (2 * tm * k_pad * in_bytes            # double-buffered input block
                + 2 * tm * c_out_pad * acc_bytes     # double-buffered output block
                + 2 * (k_pad * c_out_pad * in_bytes  # weights (default 2 buffers)
                       + c_out_pad * acc_bytes)      # bias
                + tm * c_out_pad * acc_bytes)        # accumulator slack
        if need <= budget_bytes:
            return tm
    return 8


def _im2col(x, kh, kw, sh, sw):
    """x: (B, C, H, W) -> (B*Ho*Wo, C*kh*kw), feature order matches
    PyTorch weight.reshape(C_out, C_in*kh*kw)."""
    B, C, H, W = x.shape
    Ho = (H - kh) // sh + 1
    Wo = (W - kw) // sw + 1
    if kh == 1 and kw == 1:
        patches = x[:, :, ::sh, ::sw][:, :, :Ho, :Wo]                 # (B, C, Ho, Wo)
        cols = jnp.transpose(patches, (0, 2, 3, 1)).reshape(B * Ho * Wo, C)
        return cols, Ho, Wo
    pats = []
    for i in range(kh):
        for j in range(kw):
            pats.append(x[:, :, i:i + sh * Ho:sh, j:j + sw * Wo:sw])  # (B, C, Ho, Wo)
    col = jnp.stack(pats, axis=2)                                     # (B, C, kh*kw, Ho, Wo)
    col = jnp.transpose(col, (0, 3, 4, 1, 2)).reshape(B * Ho * Wo, C * kh * kw)
    return col, Ho, Wo


# ----------------------------------------------------------------------------
# Pallas kernel: y = act(x @ W + b)   (1x1 conv over channels, BN pre-folded)
# ----------------------------------------------------------------------------
def _make_matmul_bias_act_kernel(apply_relu):
    def kernel(x_ref, w_ref, b_ref, o_ref):
        acc = jnp.dot(x_ref[...], w_ref[...],
                      preferred_element_type=jnp.float32)   # MXU, f32 accumulate
        acc = acc + b_ref[...]                               # f32 bias (BN folded in)
        if apply_relu:
            acc = jnp.maximum(acc, 0.0)
        o_ref[...] = acc.astype(o_ref.dtype)
    return kernel


def conv1x1_bn_act_pallas(cols, w_fused, b_fused, *, apply_relu=True,
                          compute_dtype=jnp.bfloat16, out_dtype=jnp.float32):
    """cols: (M, K); w_fused: (K, C_out); b_fused: (C_out,) -> (M, C_out)."""
    M, K = cols.shape
    C_out = w_fused.shape[1]

    c_out_pad = _round_up(C_out, 128)         # lane-dense, unmasked vst on output
    cap = _vmem_capacity_bytes()
    budget = int(cap * 0.6)
    vmem_limit = min(int(cap * 0.9), 96 * 1024 * 1024)
    in_bytes = jnp.dtype(compute_dtype).itemsize

    tile_m = _choose_tile_m(K, c_out_pad, budget, in_bytes=in_bytes)
    if M <= tile_m:
        tile_m = max(_round_up(M, 8), 8)      # don't over-pad tiny problems
    m_pad = _round_up(M, tile_m)

    x = cols.astype(compute_dtype)
    if m_pad != M:
        x = jnp.pad(x, ((0, m_pad - M), (0, 0)))
    w = jnp.pad(w_fused.astype(compute_dtype), ((0, 0), (0, c_out_pad - C_out)))
    b = jnp.pad(b_fused.astype(jnp.float32).reshape(1, C_out),
                ((0, 0), (0, c_out_pad - C_out)))

    cost = pl.CostEstimate(
        flops=2 * m_pad * K * c_out_pad,
        transcendentals=0,
        bytes_accessed=(m_pad * K * in_bytes + K * c_out_pad * in_bytes
                        + c_out_pad * 4 + m_pad * c_out_pad * 4),
    )

    out = pl.pallas_call(
        _make_matmul_bias_act_kernel(apply_relu),
        out_shape=jax.ShapeDtypeStruct((m_pad, c_out_pad), out_dtype),
        grid_spec=pltpu.PrefetchScalarGridSpec(
            num_scalar_prefetch=0,
            grid=(m_pad // tile_m,),
            in_specs=[
                pl.BlockSpec((tile_m, K), lambda i: (i, 0)),
                # Constant-index operands (fetched once across the grid).
                # TODO(synk): pipeline_mode=pl.Buffered(1) would drop their dead
                # second VMEM buffer; left at default buffering for compatibility.
                pl.BlockSpec((K, c_out_pad), lambda i: (0, 0)),
                pl.BlockSpec((1, c_out_pad), lambda i: (0, 0)),
            ],
            out_specs=pl.BlockSpec((tile_m, c_out_pad), lambda i: (i, 0)),
        ),
        compiler_params=pltpu.CompilerParams(
            dimension_semantics=("parallel",),
            vmem_limit_bytes=vmem_limit,
        ),
        cost_estimate=cost,
    )(x, w, b)

    return out[:M, :C_out]


# ----------------------------------------------------------------------------
# Module: Pallas equivalent of the reference PyTorch Conv2d wrapper
# ----------------------------------------------------------------------------
class Conv2dPallas:
    """out = activation(BatchNorm2d(Conv2d(x)))  (BN in eval mode, folded)."""

    def __init__(self, in_channel, out_channel, kernel_size=(1, 1),
                 stride=(1, 1), if_bn=True, activation="relu",
                 key=None, compute_dtype=jnp.bfloat16):
        self.in_channel = in_channel
        self.out_channel = out_channel
        self.kernel_size = tuple(kernel_size)
        self.stride = tuple(stride)
        self.if_bn = if_bn
        self.activation = activation
        self.compute_dtype = compute_dtype

        key = jax.random.PRNGKey(42) if key is None else key
        kh, kw = self.kernel_size
        fan_in = in_channel * kh * kw
        bound = fan_in ** -0.5
        k1, k2, k3, k4, k5, k6 = jax.random.split(key, 6)
        self.weight = jax.random.uniform(k1, (out_channel, in_channel, kh, kw),
                                         jnp.float32, -bound, bound)
        self.bias = jax.random.uniform(k2, (out_channel,), jnp.float32,
                                       -bound, bound)
        eps = 1e-5
        if if_bn:
            gamma = 1.0 + 0.1 * jax.random.normal(k3, (out_channel,), jnp.float32)
            beta = 0.1 * jax.random.normal(k4, (out_channel,), jnp.float32)
            rmean = 0.1 * jax.random.normal(k5, (out_channel,), jnp.float32)
            rvar = jnp.abs(1.0 + 0.1 * jax.random.normal(k6, (out_channel,),
                                                         jnp.float32))
            self.bn_scale = gamma / jnp.sqrt(rvar + eps)
            self.bn_shift = beta - rmean * self.bn_scale
        else:
            self.bn_scale = None
            self.bn_shift = None

    def _fused_params(self):
        kh, kw = self.kernel_size
        w2 = self.weight.reshape(self.out_channel,
                                 self.in_channel * kh * kw).T        # (K, C_out)
        b = self.bias
        if self.if_bn:
            # (x@W + b)*s + t  ==  x@(W*s) + (b*s + t)
            w2 = w2 * self.bn_scale[None, :]
            b = b * self.bn_scale + self.bn_shift
        return w2, b

    def __call__(self, x):
        kh, kw = self.kernel_size
        sh, sw = self.stride
        B = x.shape[0]
        cols, Ho, Wo = _im2col(x, kh, kw, sh, sw)
        w2, b = self._fused_params()
        out2d = conv1x1_bn_act_pallas(
            cols, w2, b,
            apply_relu=(self.activation == "relu"),
            compute_dtype=self.compute_dtype,
            out_dtype=x.dtype)
        out = out2d.reshape(B, Ho, Wo, self.out_channel)
        return jnp.transpose(out, (0, 3, 1, 2))                      # (B, C_out, Ho, Wo)

    def reference(self, x):
        """Plain-JAX f32 reference with identical (eval-mode BN) semantics."""
        kh, kw = self.kernel_size
        sh, sw = self.stride
        B = x.shape[0]
        cols, Ho, Wo = _im2col(x, kh, kw, sh, sw)
        w2, b = self._fused_params()
        y = cols.astype(jnp.float32) @ w2 + b
        if self.activation == "relu":
            y = jnp.maximum(y, 0.0)
        return jnp.transpose(y.reshape(B, Ho, Wo, self.out_channel), (0, 3, 1, 2))


# ----------------------------------------------------------------------------
if __name__ == "__main__":
    key = jax.random.PRNGKey(0)
    B, C_in, H, W = 2, 4, 16, 16
    C_out = 32

    k_x, k_p = jax.random.split(key)
    x = jax.random.normal(k_x, (B, C_in, H, W), jnp.float32)

    module = Conv2dPallas(C_in, C_out, kernel_size=(1, 1), stride=(1, 1),
                          if_bn=True, activation="relu", key=k_p)

    out = module(x)
    jax.block_until_ready(out)

    assert out.shape == (B, C_out, H, W), out.shape

    ref = module.reference(x)
    err = float(jnp.max(jnp.abs(out - ref)))
    assert err < 2e-2, f"max abs error vs reference: {err}"

    print("KERNEL_OK")
</pallas_src>

<mosaic_0001>
module attributes {stable_mosaic.version = 11 : i64} {
  func.func @kernel(%arg0: i32, %arg1: memref<512x4xbf16, #tpu.memory_space<vmem>>, %arg2: memref<4x128xbf16, #tpu.memory_space<vmem>>, %arg3: memref<1x128xf32, #tpu.memory_space<vmem>>, %arg4: memref<512x128xf32, #tpu.memory_space<vmem>>) attributes {dimension_semantics = [#tpu.dimension_semantics<parallel>], iteration_bounds = array<i64: 1>, scalar_prefetch = 0 : i64, scratch_operands = 0 : i64, tpu.core_type = #tpu.core_type<tc>, window_params = [{transform_indices = @transform_0, window_bounds = array<i64: 512, 4>}, {pipeline_mode = #tpu.pipeline_mode<synchronous>, transform_indices = @transform_1, window_bounds = array<i64: 4, 128>}, {pipeline_mode = #tpu.pipeline_mode<synchronous>, transform_indices = @transform_2, window_bounds = array<i64: 1, 128>}, {transform_indices = @transform_3, window_bounds = array<i64: 512, 128>}]} {
    %c0 = arith.constant 0 : index
    %c0_0 = arith.constant 0 : index
    %0 = vector.load %arg1[%c0, %c0_0] : memref<512x4xbf16, #tpu.memory_space<vmem>>, vector<512x4xbf16>
    %c0_1 = arith.constant 0 : index
    %c0_2 = arith.constant 0 : index
    %1 = vector.load %arg2[%c0_1, %c0_2] : memref<4x128xbf16, #tpu.memory_space<vmem>>, vector<4x128xbf16>
    %cst = arith.constant dense<0.000000e+00> : vector<512x128xf32>
    %2 = tpu.matmul %0, %1, %cst {dimension_numbers = #tpu.dot_dimension_numbers<[1], [0], [0], [1], [0, 0, 1, 1], [], []>} : vector<512x4xbf16>, vector<4x128xbf16>, vector<512x128xf32> -> vector<512x128xf32>
    %c0_3 = arith.constant 0 : index
    %c0_4 = arith.constant 0 : index
    %3 = vector.load %arg3[%c0_3, %c0_4] : memref<1x128xf32, #tpu.memory_space<vmem>>, vector<1x128xf32>
    %4 = vector.broadcast %3 : vector<1x128xf32> to vector<512x128xf32>
    %5 = arith.addf %2, %4 : vector<512x128xf32>
    %cst_5 = arith.constant 0.000000e+00 : f32
    %6 = vector.broadcast %cst_5 : f32 to vector<512x128xf32>
    %7 = arith.maximumf %5, %6 : vector<512x128xf32>
    %c0_6 = arith.constant 0 : index
    %c0_7 = arith.constant 0 : index
    %8 = vector.load %arg4[%c0_6, %c0_7] : memref<512x128xf32, #tpu.memory_space<vmem>>, vector<512x128xf32>
    tpu.vector_store %arg4[%c0_6, %c0_7], %7 {strides = array<i32>} : memref<512x128xf32, #tpu.memory_space<vmem>>, vector<512x128xf32>,
    return
  }
  func.func @transform_0(%arg0: i32) -> (i32, i32) {
    %c0_i32 = arith.constant 0 : i32
    %c0_i32_0 = arith.constant 0 : i32
    return %arg0, %c0_i32 : i32, i32
  }
  func.func @transform_1(%arg0: i32) -> (i32, i32) {
    %c0_i32 = arith.constant 0 : i32
    %c0_i32_0 = arith.constant 0 : i32
    %c0_i32_1 = arith.constant 0 : i32
    return %c0_i32, %c0_i32_0 : i32, i32
  }
  func.func @transform_2(%arg0: i32) -> (i32, i32) {
    %c0_i32 = arith.constant 0 : i32
    %c0_i32_0 = arith.constant 0 : i32
    %c0_i32_1 = arith.constant 0 : i32
    return %c0_i32, %c0_i32_0 : i32, i32
  }
  func.func @transform_3(%arg0: i32) -> (i32, i32) {
    %c0_i32 = arith.constant 0 : i32
    %c0_i32_0 = arith.constant 0 : i32
    return %arg0, %c0_i32 : i32, i32
  }
}

</mosaic_0001>

<bundles_post_ra>
// kernel: tpu_custom_call.1
= control target key start
LH: loop header
LB: loop body
LE: loop exit
PB: predicated region body
PF: predicated region fallthrough
CT: control target
= control target key end

     0   :  { %vm345_vm0 = vcmask 1041408   ;;  %vm248_vm1 = vcmask 31744   ;;  %s1244_s0 = inlined_call_operand.vmem [shape: bf16[512,4], index: 0, kind: input, shape index: {}]   ;;  %s1245_s1 = inlined_call_operand.vmem [shape: bf16[4,128], index: 1, kind: input, shape index: {}]   ;;  %s1246_s2 = inlined_call_operand.vmem [shape: f32[1,128], index: 2, kind: input, shape index: {}]   ;;  %s1247_s3 = inlined_call_operand.hbm [shape: f32[512,128], index: 3, kind: output, shape index: {}]  }
   0x1   :  { %v80_v0 = vld [vmem:[%s1245_s1] sm:$0x3]  ;;  %v955_v4 = vld [vmem:[%s1244_s0 + $0x8] sm:$0xff]   ;;  %v957_v6 = vld [vmem:[%s1244_s0 + $0x10] sm:$0xff]  }
   0x2   :  { %v953_v1 = vld [vmem:[%s1244_s0] sm:$0xff]   ;;  %948 = vmatprep.subr.msk.bf16.mxu0 %vm345_vm0, %v80_v0  ;;  %949 = vmatprep.subr.msk.bf16.mxu1 %vm345_vm0, %v80_v0  ;;  %v347_v2 = vsel %vm345_vm0, %v80_v0, 0  ;;  %v956_v5 = vld [vmem:[%s1244_s0 + $0x88] sm:$0xff]   ;;  %v958_v7 = vld [vmem:[%s1244_s0 + $0x90] sm:$0xff]  }
   0x3   :  { %881 = vmatpush3.bf16.msra.mxu0 %v347_v2  ;;  %947 = vmatpush3.bf16.msra.mxu1 %v347_v2  ;;  %v954_v3 = vld [vmem:[%s1244_s0 + $0x80] sm:$0xff]   ;;  %v959_v8 = vld [vmem:[%s1244_s0 + $0x18] sm:$0xff]   ;;  %v963_v12 = vld [vmem:[%s1244_s0 + $0x28] sm:$0xff]  }
   0x4   :  { %882 = vmatprep.mubr.msk.bf16.mxu0 %vm248_vm1, %v953_v1  ;;  %914 = vmatprep.mubr.msk.bf16.mxu1 %vm248_vm1, %v954_v3  ;;  %v960_v9 = vld [vmem:[%s1244_s0 + $0x98] sm:$0xff]   ;;  %v961_v10 = vld [vmem:[%s1244_s0 + $0x20] sm:$0xff]   ;;  %v964_v13 = vld [vmem:[%s1244_s0 + $0xa8] sm:$0xff]  }
   0x5   :  { %v962_v11 = vld [vmem:[%s1244_s0 + $0xa0] sm:$0xff]   ;;  %v965_v14 = vld [vmem:[%s1244_s0 + $0x30] sm:$0xff]   ;;  %v967_v16 = vld [vmem:[%s1244_s0 + $0x38] sm:$0xff]  }
   0x6   :  { %883 = vmatmul.mubr.msk.bf16.vlgmr.msra.gmra.mrb[0].mxu0 %vm248_vm1, %v955_v4  ;;  %915 = vmatmul.mubr.msk.bf16.vlgmr.msra.gmra.mrb[0].mxu1 %vm248_vm1, %v956_v5  ;;  %v966_v15 = vld [vmem:[%s1244_s0 + $0xb0] sm:$0xff]   ;;  %v968_v17 = vld [vmem:[%s1244_s0 + $0xb8] sm:$0xff]   ;;  %v969_v18 = vld [vmem:[%s1244_s0 + $0x40] sm:$0xff]  }
   0x7   :  { %886 = vmatprep.mubr.msk.bf16.mxu0 %vm248_vm1, %v957_v6  ;;  %918 = vmatprep.mubr.msk.bf16.mxu1 %vm248_vm1, %v958_v7  ;;  %v970_v19 = vld [vmem:[%s1244_s0 + $0xc0] sm:$0xff]  }
   0xe   :  { %887 = vmatmul.mubr.msk.bf16.gmra.mrb[4].mxu0 %vm248_vm1, %v959_v8  ;;  %919 = vmatmul.mubr.msk.bf16.gmra.mrb[4].mxu1 %vm248_vm1, %v960_v9 }
   0xf   :  { %890 = vmatprep.mubr.msk.bf16.mxu0 %vm248_vm1, %v961_v10  ;;  %922 = vmatprep.mubr.msk.bf16.mxu1 %vm248_vm1, %v962_v11 }
  0x16   :  { %891 = vmatmul.mubr.msk.bf16.gmra.mrb[8].mxu0 %vm248_vm1, %v963_v12  ;;  %923 = vmatmul.mubr.msk.bf16.gmra.mrb[8].mxu1 %vm248_vm1, %v964_v13 }
  0x17   :  { %894 = vmatprep.mubr.msk.bf16.mxu0 %vm248_vm1, %v965_v14  ;;  %926 = vmatprep.mubr.msk.bf16.mxu1 %vm248_vm1, %v966_v15 }
  0x1e   :  { %895 = vmatmul.mubr.msk.bf16.gmra.mrb[12].mxu0 %vm248_vm1, %v967_v16  ;;  %927 = vmatmul.mubr.msk.bf16.gmra.mrb[12].mxu1 %vm248_vm1, %v968_v17 }
  0x1f   :  { %898 = vmatprep.mubr.msk.bf16.mxu0 %vm248_vm1, %v969_v18  ;;  %930 = vmatprep.mubr.msk.bf16.mxu1 %vm248_vm1, %v970_v19 }
  0x20   :  { %8 = vsyncpa [#allocation3], 0  ;;  %v971_v20 = vld [vmem:[%s1244_s0 + $0x48] sm:$0xff]   ;;  %v973_v22 = vld [vmem:[%s1244_s0 + $0x50] sm:$0xff]  }
  0x21   :  { %v972_v21 = vld [vmem:[%s1244_s0 + $0xc8] sm:$0xff]   ;;  %v974_v23 = vld [vmem:[%s1244_s0 + $0xd0] sm:$0xff]   ;;  %v975_v24 = vld [vmem:[%s1244_s0 + $0x58] sm:$0xff]  }
  0x22   :  { %v976_v25 = vld [vmem:[%s1244_s0 + $0xd8] sm:$0xff]   ;;  %v977_v26 = vld [vmem:[%s1244_s0 + $0x60] sm:$0xff]   ;;  %v979_v28 = vld [vmem:[%s1244_s0 + $0x68] sm:$0xff]  }
  0x23   :  { %v978_v27 = vld [vmem:[%s1244_s0 + $0xe0] sm:$0xff]   ;;  %v980_v29 = vld [vmem:[%s1244_s0 + $0xe8] sm:$0xff]   ;;  %v981_v30 = vld [vmem:[%s1244_s0 + $0x70] sm:$0xff]  }
  0x24   :  { %v982_v31 = vld [vmem:[%s1244_s0 + $0xf0] sm:$0xff]   ;;  %v983_v32 = vld [vmem:[%s1244_s0 + $0x78] sm:$0xff]   ;;  %v1166_v34 = vld [vmem:[%s1246_s2] ss:$0 sm:$0xff] }
  0x25   :  { %v984_v33 = vld [vmem:[%s1244_s0 + $0xf8] sm:$0xff]   ;;  %s1009_s0 = smov [#allocation2]  }
  0x26   :  { %899 = vmatmul.mubr.msk.bf16.gmra.mrb[16].mxu0 %vm248_vm1, %v971_v20  ;;  %931 = vmatmul.mubr.msk.bf16.gmra.mrb[16].mxu1 %vm248_vm1, %v972_v21  ;;  %s771_s2 = sshll.u32 %s1009_s0, 4  ;;  %s772_s2 = int_to_ptr.vmem [resolvable:$true] %s771_s2 }
  0x27   :  { %902 = vmatprep.mubr.msk.bf16.mxu0 %vm248_vm1, %v973_v22  ;;  %934 = vmatprep.mubr.msk.bf16.mxu1 %vm248_vm1, %v974_v23  ;;  %s985_s23 = scalar_lea.vmem %s772_s2, 8192  ;;  %p990_p1 = scmp.lt.s32.totalorder %s772_s2, %s772_s2 }
  0x28   :  { %p986_p0 = scmp.ne.s32.totalorder %s772_s2, %s985_s23  ;;  %p991_p2 = scmp.lt.s32.totalorder %s985_s23, %s985_s23 }
  0x2a   :  { %p992_p3 = por %p991_p2, %p990_p1 }
  0x2c   :  { %p993_p4 = pnand %p992_p3, %p986_p0 }
  0x2e   :  { %903 = vmatmul.mubr.msk.bf16.gmra.mrb[20].mxu0 %vm248_vm1, %v975_v24  ;;  %935 = vmatmul.mubr.msk.bf16.gmra.mrb[20].mxu1 %vm248_vm1, %v976_v25 }
  0x2f   :  { %906 = vmatprep.mubr.msk.bf16.mxu0 %vm248_vm1, %v977_v26  ;;  %938 = vmatprep.mubr.msk.bf16.mxu1 %vm248_vm1, %v978_v27 }
  0x36   :  { %907 = vmatmul.mubr.msk.bf16.gmra.mrb[24].mxu0 %vm248_vm1, %v979_v28  ;;  %939 = vmatmul.mubr.msk.bf16.gmra.mrb[24].mxu1 %vm248_vm1, %v980_v29 }
  0x37   :  { %910 = vmatprep.mubr.msk.bf16.mxu0 %vm248_vm1, %v981_v30  ;;  %942 = vmatprep.mubr.msk.bf16.mxu1 %vm248_vm1, %v982_v31 }
  0x3e   :  { %911 = vmatmul.mubr.msk.bf16.gmra.mrb[28].mxu0 %vm248_vm1, %v983_v32  ;;  %943 = vmatmul.mubr.msk.bf16.gmra.mrb[28].mxu1 %vm248_vm1, %v984_v33 }
  0xd9   :  { %v884_v35 = vpop.f32.mrb[0].mxu0  ;;  %v916_v37 = vpop.f32.mrb[0].mxu1 }
  0xda   :  { %v392_v36 = vadd.f32 %v884_v35, %v1166_v34  ;;  %v383_v38 = vpop.f32.mrb[1].mxu0  ;;  %v520_v39 = vadd.f32 %v916_v37, %v1166_v34  ;;  %v511_v41 = vpop.f32.mrb[1].mxu1 }
  0xdb   :  { %v384_v40 = vadd.f32 %v1166_v34, %v383_v38  ;;  %v885_v42 = vpop.f32.mrb[2].mxu0  ;;  %v512_v44 = vadd.f32 %v1166_v34, %v511_v41  ;;  %v917_v46 = vpop.f32.mrb[2].mxu1 }
  0xdc   :  { %v640_v43 = vmax.f32 %v392_v36, 0.0  ;;  %v395_v45 = vadd.f32 %v885_v42, %v1166_v34  ;;  %v386_v47 = vpop.f32.mrb[3].mxu0  ;;  %v672_v48 = vmax.f32 %v520_v39, 0.0  ;;  %v523_v50 = vadd.f32 %v917_v46, %v1166_v34  ;;  %v514_v52 = vpop.f32.mrb[3].mxu1 }
  0xdd   :  { %v638_v49 = vmax.f32 %v384_v40, 0.0  ;;  %v387_v51 = vadd.f32 %v1166_v34, %v386_v47  ;;  %v670_v53 = vmax.f32 %v512_v44, 0.0  ;;  %v515_v55 = vadd.f32 %v1166_v34, %v514_v52 }
  0xde   :  { %704 = vst [vmem:[#allocation2 + $0x10] sm:$0xff] %v640_v43  ;;  %v641_v54 = vmax.f32 %v395_v45, 0.0  ;;  %736 = vst [vmem:[#allocation2 + $0x110] sm:$0xff] %v672_v48  ;;  %v673_v56 = vmax.f32 %v523_v50, 0.0 }
  0xdf   :  { %702 = vst [vmem:[#allocation2] sm:$0xff] %v638_v49  ;;  %v639_v57 = vmax.f32 %v387_v51, 0.0  ;;  %734 = vst [vmem:[#allocation2 + $0x100] sm:$0xff] %v670_v53  ;;  %v671_v58 = vmax.f32 %v515_v55, 0.0 }
  0xe0   :  { %705 = vst [vmem:[#allocation2 + $0x18] sm:$0xff] %v641_v54  ;;  %737 = vst [vmem:[#allocation2 + $0x118] sm:$0xff] %v673_v56 }
  0xe1   :  { %703 = vst [vmem:[#allocation2 + $0x8] sm:$0xff] %v639_v57  ;;  %v888_v59 = vpop.f32.mrb[4].mxu0  ;;  %735 = vst [vmem:[#allocation2 + $0x108] sm:$0xff] %v671_v58  ;;  %v920_v61 = vpop.f32.mrb[4].mxu1 }
  0xe2   :  { %v408_v60 = vadd.f32 %v888_v59, %v1166_v34  ;;  %v399_v62 = vpop.f32.mrb[5].mxu0  ;;  %v536_v63 = vadd.f32 %v920_v61, %v1166_v34  ;;  %v527_v1 = vpop.f32.mrb[5].mxu1 }
  0xe3   :  { %v400_v0 = vadd.f32 %v1166_v34, %v399_v62  ;;  %v889_v2 = vpop.f32.mrb[6].mxu0  ;;  %v528_v4 = vadd.f32 %v1166_v34, %v527_v1  ;;  %v921_v6 = vpop.f32.mrb[6].mxu1 }
  0xe4   :  { %v644_v3 = vmax.f32 %v408_v60, 0.0  ;;  %v411_v5 = vadd.f32 %v889_v2, %v1166_v34  ;;  %v402_v7 = vpop.f32.mrb[7].mxu0  ;;  %v676_v8 = vmax.f32 %v536_v63, 0.0  ;;  %v539_v10 = vadd.f32 %v921_v6, %v1166_v34  ;;  %v530_v12 = vpop.f32.mrb[7].mxu1 }
  0xe5   :  { %v642_v9 = vmax.f32 %v400_v0, 0.0  ;;  %v403_v11 = vadd.f32 %v1166_v34, %v402_v7  ;;  %v674_v13 = vmax.f32 %v528_v4, 0.0  ;;  %v531_v15 = vadd.f32 %v1166_v34, %v530_v12 }
  0xe6   :  { %708 = vst [vmem:[#allocation2 + $0x30] sm:$0xff] %v644_v3  ;;  %v645_v14 = vmax.f32 %v411_v5, 0.0  ;;  %740 = vst [vmem:[#allocation2 + $0x130] sm:$0xff] %v676_v8  ;;  %v677_v16 = vmax.f32 %v539_v10, 0.0 }
  0xe7   :  { %706 = vst [vmem:[#allocation2 + $0x20] sm:$0xff] %v642_v9  ;;  %v643_v17 = vmax.f32 %v403_v11, 0.0  ;;  %738 = vst [vmem:[#allocation2 + $0x120] sm:$0xff] %v674_v13  ;;  %v675_v18 = vmax.f32 %v531_v15, 0.0 }
  0xe8   :  { %709 = vst [vmem:[#allocation2 + $0x38] sm:$0xff] %v645_v14  ;;  %741 = vst [vmem:[#allocation2 + $0x138] sm:$0xff] %v677_v16 }
  0xe9   :  { %707 = vst [vmem:[#allocation2 + $0x28] sm:$0xff] %v643_v17  ;;  %v892_v19 = vpop.f32.mrb[8].mxu0  ;;  %739 = vst [vmem:[#allocation2 + $0x128] sm:$0xff] %v675_v18  ;;  %v924_v21 = vpop.f32.mrb[8].mxu1 }
  0xea   :  { %v424_v20 = vadd.f32 %v892_v19, %v1166_v34  ;;  %v415_v22 = vpop.f32.mrb[9].mxu0  ;;  %v552_v23 = vadd.f32 %v924_v21, %v1166_v34  ;;  %v543_v25 = vpop.f32.mrb[9].mxu1 }
  0xeb   :  { %v416_v24 = vadd.f32 %v1166_v34, %v415_v22  ;;  %v893_v26 = vpop.f32.mrb[10].mxu0  ;;  %v544_v28 = vadd.f32 %v1166_v34, %v543_v25  ;;  %v925_v30 = vpop.f32.mrb[10].mxu1 }
  0xec   :  { %v648_v27 = vmax.f32 %v424_v20, 0.0  ;;  %v427_v29 = vadd.f32 %v893_v26, %v1166_v34  ;;  %v418_v31 = vpop.f32.mrb[11].mxu0  ;;  %v680_v32 = vmax.f32 %v552_v23, 0.0  ;;  %v555_v35 = vadd.f32 %v925_v30, %v1166_v34  ;;  %v546_v37 = vpop.f32.mrb[11].mxu1 }
  0xed   :  { %v646_v33 = vmax.f32 %v416_v24, 0.0  ;;  %v419_v36 = vadd.f32 %v1166_v34, %v418_v31  ;;  %v678_v38 = vmax.f32 %v544_v28, 0.0  ;;  %v547_v40 = vadd.f32 %v1166_v34, %v546_v37 }
  0xee   :  { %712 = vst [vmem:[#allocation2 + $0x50] sm:$0xff] %v648_v27  ;;  %v649_v39 = vmax.f32 %v427_v29, 0.0  ;;  %744 = vst [vmem:[#allocation2 + $0x150] sm:$0xff] %v680_v32  ;;  %v681_v41 = vmax.f32 %v555_v35, 0.0 }
  0xef   :  { %710 = vst [vmem:[#allocation2 + $0x40] sm:$0xff] %v646_v33  ;;  %v647_v42 = vmax.f32 %v419_v36, 0.0  ;;  %742 = vst [vmem:[#allocation2 + $0x140] sm:$0xff] %v678_v38  ;;  %v679_v43 = vmax.f32 %v547_v40, 0.0 }
  0xf0   :  { %713 = vst [vmem:[#allocation2 + $0x58] sm:$0xff] %v649_v39  ;;  %745 = vst [vmem:[#allocation2 + $0x158] sm:$0xff] %v681_v41 }
  0xf1   :  { %711 = vst [vmem:[#allocation2 + $0x48] sm:$0xff] %v647_v42  ;;  %v896_v44 = vpop.f32.mrb[12].mxu0  ;;  %743 = vst [vmem:[#allocation2 + $0x148] sm:$0xff] %v679_v43  ;;  %v928_v46 = vpop.f32.mrb[12].mxu1 }
  0xf2   :  { %v440_v45 = vadd.f32 %v896_v44, %v1166_v34  ;;  %v431_v47 = vpop.f32.mrb[13].mxu0  ;;  %v568_v48 = vadd.f32 %v928_v46, %v1166_v34  ;;  %v559_v50 = vpop.f32.mrb[13].mxu1 }
  0xf3   :  { %v432_v49 = vadd.f32 %v1166_v34, %v431_v47  ;;  %v897_v51 = vpop.f32.mrb[14].mxu0  ;;  %v560_v53 = vadd.f32 %v1166_v34, %v559_v50  ;;  %v929_v55 = vpop.f32.mrb[14].mxu1 }
  0xf4   :  { %v652_v52 = vmax.f32 %v440_v45, 0.0  ;;  %v443_v54 = vadd.f32 %v897_v51, %v1166_v34  ;;  %v434_v56 = vpop.f32.mrb[15].mxu0  ;;  %v684_v57 = vmax.f32 %v568_v48, 0.0  ;;  %v571_v59 = vadd.f32 %v929_v55, %v1166_v34  ;;  %v562_v61 = vpop.f32.mrb[15].mxu1 }
  0xf5   :  { %v650_v58 = vmax.f32 %v432_v49, 0.0  ;;  %v435_v60 = vadd.f32 %v1166_v34, %v434_v56  ;;  %v682_v62 = vmax.f32 %v560_v53, 0.0  ;;  %v563_v0 = vadd.f32 %v1166_v34, %v562_v61 }
  0xf6   :  { %716 = vst [vmem:[#allocation2 + $0x70] sm:$0xff] %v652_v52  ;;  %v653_v63 = vmax.f32 %v443_v54, 0.0  ;;  %748 = vst [vmem:[#allocation2 + $0x170] sm:$0xff] %v684_v57  ;;  %v685_v1 = vmax.f32 %v571_v59, 0.0 }
  0xf7   :  { %714 = vst [vmem:[#allocation2 + $0x60] sm:$0xff] %v650_v58  ;;  %v651_v2 = vmax.f32 %v435_v60, 0.0  ;;  %746 = vst [vmem:[#allocation2 + $0x160] sm:$0xff] %v682_v62  ;;  %v683_v3 = vmax.f32 %v563_v0, 0.0 }
  0xf8   :  { %717 = vst [vmem:[#allocation2 + $0x78] sm:$0xff] %v653_v63  ;;  %749 = vst [vmem:[#allocation2 + $0x178] sm:$0xff] %v685_v1 }
  0xf9   :  { %715 = vst [vmem:[#allocation2 + $0x68] sm:$0xff] %v651_v2  ;;  %v900_v4 = vpop.f32.mrb[16].mxu0  ;;  %747 = vst [vmem:[#allocation2 + $0x168] sm:$0xff] %v683_v3  ;;  %v932_v6 = vpop.f32.mrb[16].mxu1 }
  0xfa   :  { %v456_v5 = vadd.f32 %v900_v4, %v1166_v34  ;;  %v447_v7 = vpop.f32.mrb[17].mxu0  ;;  %v584_v8 = vadd.f32 %v932_v6, %v1166_v34  ;;  %v575_v10 = vpop.f32.mrb[17].mxu1 }
  0xfb   :  { %v448_v9 = vadd.f32 %v1166_v34, %v447_v7  ;;  %v901_v11 = vpop.f32.mrb[18].mxu0  ;;  %v576_v13 = vadd.f32 %v1166_v34, %v575_v10  ;;  %v933_v15 = vpop.f32.mrb[18].mxu1 }
  0xfc   :  { %v656_v12 = vmax.f32 %v456_v5, 0.0  ;;  %v459_v14 = vadd.f32 %v901_v11, %v1166_v34  ;;  %v450_v16 = vpop.f32.mrb[19].mxu0  ;;  %v688_v17 = vmax.f32 %v584_v8, 0.0  ;;  %v587_v19 = vadd.f32 %v933_v15, %v1166_v34  ;;  %v578_v21 = vpop.f32.mrb[19].mxu1 }
  0xfd   :  { %v654_v18 = vmax.f32 %v448_v9, 0.0  ;;  %v451_v20 = vadd.f32 %v1166_v34, %v450_v16  ;;  %v686_v22 = vmax.f32 %v576_v13, 0.0  ;;  %v579_v24 = vadd.f32 %v1166_v34, %v578_v21 }
  0xfe   :  { %720 = vst [vmem:[#allocation2 + $0x90] sm:$0xff] %v656_v12  ;;  %v657_v23 = vmax.f32 %v459_v14, 0.0  ;;  %752 = vst [vmem:[#allocation2 + $0x190] sm:$0xff] %v688_v17  ;;  %v689_v25 = vmax.f32 %v587_v19, 0.0 }
  0xff   :  { %718 = vst [vmem:[#allocation2 + $0x80] sm:$0xff] %v654_v18  ;;  %v655_v26 = vmax.f32 %v451_v20, 0.0  ;;  %750 = vst [vmem:[#allocation2 + $0x180] sm:$0xff] %v686_v22  ;;  %v687_v27 = vmax.f32 %v579_v24, 0.0 }
 0x100   :  { %721 = vst [vmem:[#allocation2 + $0x98] sm:$0xff] %v657_v23  ;;  %753 = vst [vmem:[#allocation2 + $0x198] sm:$0xff] %v689_v25 }
 0x101   :  { %719 = vst [vmem:[#allocation2 + $0x88] sm:$0xff] %v655_v26  ;;  %v904_v28 = vpop.f32.mrb[20].mxu0  ;;  %751 = vst [vmem:[#allocation2 + $0x188] sm:$0xff] %v687_v27  ;;  %v936_v30 = vpop.f32.mrb[20].mxu1 }
 0x102   :  { %v472_v29 = vadd.f32 %v904_v28, %v1166_v34  ;;  %v463_v31 = vpop.f32.mrb[21].mxu0  ;;  %v600_v32 = vadd.f32 %v936_v30, %v1166_v34  ;;  %v591_v35 = vpop.f32.mrb[21].mxu1 }
 0x103   :  { %v464_v33 = vadd.f32 %v1166_v34, %v463_v31  ;;  %v905_v36 = vpop.f32.mrb[22].mxu0  ;;  %v592_v38 = vadd.f32 %v1166_v34, %v591_v35  ;;  %v937_v40 = vpop.f32.mrb[22].mxu1 }
 0x104   :  { %v660_v37 = vmax.f32 %v472_v29, 0.0  ;;  %v475_v39 = vadd.f32 %v905_v36, %v1166_v34  ;;  %v466_v41 = vpop.f32.mrb[23].mxu0  ;;  %v692_v42 = vmax.f32 %v600_v32, 0.0  ;;  %v603_v44 = vadd.f32 %v937_v40, %v1166_v34  ;;  %v594_v46 = vpop.f32.mrb[23].mxu1 }
 0x105   :  { %v658_v43 = vmax.f32 %v464_v33, 0.0  ;;  %v467_v45 = vadd.f32 %v1166_v34, %v466_v41  ;;  %v690_v47 = vmax.f32 %v592_v38, 0.0  ;;  %v595_v49 = vadd.f32 %v1166_v34, %v594_v46 }
 0x106   :  { %724 = vst [vmem:[#allocation2 + $0xb0] sm:$0xff] %v660_v37  ;;  %v661_v48 = vmax.f32 %v475_v39, 0.0  ;;  %756 = vst [vmem:[#allocation2 + $0x1b0] sm:$0xff] %v692_v42  ;;  %v693_v50 = vmax.f32 %v603_v44, 0.0 }
 0x107   :  { %722 = vst [vmem:[#allocation2 + $0xa0] sm:$0xff] %v658_v43  ;;  %v659_v51 = vmax.f32 %v467_v45, 0.0  ;;  %754 = vst [vmem:[#allocation2 + $0x1a0] sm:$0xff] %v690_v47  ;;  %v691_v52 = vmax.f32 %v595_v49, 0.0 }
 0x108   :  { %725 = vst [vmem:[#allocation2 + $0xb8] sm:$0xff] %v661_v48  ;;  %757 = vst [vmem:[#allocation2 + $0x1b8] sm:$0xff] %v693_v50 }
 0x109   :  { %723 = vst [vmem:[#allocation2 + $0xa8] sm:$0xff] %v659_v51  ;;  %v908_v53 = vpop.f32.mrb[24].mxu0  ;;  %755 = vst [vmem:[#allocation2 + $0x1a8] sm:$0xff] %v691_v52  ;;  %v940_v55 = vpop.f32.mrb[24].mxu1 }
 0x10a   :  { %v488_v54 = vadd.f32 %v908_v53, %v1166_v34  ;;  %v479_v56 = vpop.f32.mrb[25].mxu0  ;;  %v616_v57 = vadd.f32 %v940_v55, %v1166_v34  ;;  %v607_v59 = vpop.f32.mrb[25].mxu1 }
 0x10b   :  { %v480_v58 = vadd.f32 %v1166_v34, %v479_v56  ;;  %v909_v60 = vpop.f32.mrb[26].mxu0  ;;  %v608_v62 = vadd.f32 %v1166_v34, %v607_v59  ;;  %v941_v0 = vpop.f32.mrb[26].mxu1 }
 0x10c   :  { %v664_v61 = vmax.f32 %v488_v54, 0.0  ;;  %v491_v63 = vadd.f32 %v909_v60, %v1166_v34  ;;  %v482_v1 = vpop.f32.mrb[27].mxu0  ;;  %v696_v2 = vmax.f32 %v616_v57, 0.0  ;;  %v619_v4 = vadd.f32 %v941_v0, %v1166_v34  ;;  %v610_v6 = vpop.f32.mrb[27].mxu1 }
 0x10d   :  { %v662_v3 = vmax.f32 %v480_v58, 0.0  ;;  %v483_v5 = vadd.f32 %v1166_v34, %v482_v1  ;;  %v694_v7 = vmax.f32 %v608_v62, 0.0  ;;  %v611_v9 = vadd.f32 %v1166_v34, %v610_v6 }
 0x10e   :  { %728 = vst [vmem:[#allocation2 + $0xd0] sm:$0xff] %v664_v61  ;;  %v665_v8 = vmax.f32 %v491_v63, 0.0  ;;  %760 = vst [vmem:[#allocation2 + $0x1d0] sm:$0xff] %v696_v2  ;;  %v697_v10 = vmax.f32 %v619_v4, 0.0 }
 0x10f   :  { %726 = vst [vmem:[#allocation2 + $0xc0] sm:$0xff] %v662_v3  ;;  %v663_v11 = vmax.f32 %v483_v5, 0.0  ;;  %758 = vst [vmem:[#allocation2 + $0x1c0] sm:$0xff] %v694_v7  ;;  %v695_v12 = vmax.f32 %v611_v9, 0.0 }
 0x110   :  { %729 = vst [vmem:[#allocation2 + $0xd8] sm:$0xff] %v665_v8  ;;  %761 = vst [vmem:[#allocation2 + $0x1d8] sm:$0xff] %v697_v10 }
 0x111   :  { %727 = vst [vmem:[#allocation2 + $0xc8] sm:$0xff] %v663_v11  ;;  %v912_v13 = vpop.f32.mrb[28].mxu0  ;;  %759 = vst [vmem:[#allocation2 + $0x1c8] sm:$0xff] %v695_v12  ;;  %v944_v15 = vpop.f32.mrb[28].mxu1 }
 0x112   :  { %v504_v14 = vadd.f32 %v912_v13, %v1166_v34  ;;  %v495_v16 = vpop.f32.mrb[29].mxu0  ;;  %v632_v17 = vadd.f32 %v944_v15, %v1166_v34  ;;  %v623_v19 = vpop.f32.mrb[29].mxu1 }
 0x113   :  { %v496_v18 = vadd.f32 %v1166_v34, %v495_v16  ;;  %v913_v20 = vpop.f32.mrb[30].mxu0  ;;  %v624_v22 = vadd.f32 %v1166_v34, %v623_v19  ;;  %v945_v24 = vpop.f32.mrb[30].mxu1 }
 0x114   :  { %v668_v21 = vmax.f32 %v504_v14, 0.0  ;;  %v507_v23 = vadd.f32 %v913_v20, %v1166_v34  ;;  %v498_v25 = vpop.f32.mrb[31].mxu0  ;;  %v700_v26 = vmax.f32 %v632_v17, 0.0  ;;  %v635_v28 = vadd.f32 %v945_v24, %v1166_v34  ;;  %v626_v30 = vpop.f32.mrb[31].mxu1 }
 0x115   :  { %v666_v27 = vmax.f32 %v496_v18, 0.0  ;;  %v499_v29 = vadd.f32 %v1166_v34, %v498_v25  ;;  %v698_v31 = vmax.f32 %v624_v22, 0.0  ;;  %v627_v33 = vadd.f32 %v1166_v34, %v626_v30 }
 0x116   :  { %732 = vst [vmem:[#allocation2 + $0xf0] sm:$0xff] %v668_v21  ;;  %v669_v32 = vmax.f32 %v507_v23, 0.0  ;;  %764 = vst [vmem:[#allocation2 + $0x1f0] sm:$0xff] %v700_v26  ;;  %v701_v35 = vmax.f32 %v635_v28, 0.0 }
 0x117   :  { %730 = vst [vmem:[#allocation2 + $0xe0] sm:$0xff] %v666_v27  ;;  %v667_v36 = vmax.f32 %v499_v29, 0.0  ;;  %762 = vst [vmem:[#allocation2 + $0x1e0] sm:$0xff] %v698_v31  ;;  %v699_v37 = vmax.f32 %v627_v33, 0.0 }
 0x118   :  { %733 = vst [vmem:[#allocation2 + $0xf8] sm:$0xff] %v669_v32  ;;  %765 = vst [vmem:[#allocation2 + $0x1f8] sm:$0xff] %v701_v35 }
 0x119   :  { %731 = vst [vmem:[#allocation2 + $0xe8] sm:$0xff] %v667_v36  ;;  %763 = vst [vmem:[#allocation2 + $0x1e8] sm:$0xff] %v699_v37 }
 0x11a   :  { %996 = shalt.err (!%p993_p4)
}
 0x11b   :  { %s997_s26 = scalar_lea.hbm %s1247_s3, 8192 }
 0x11c   :  { %p998_p5 = scmp.ne.s32.totalorder %s1247_s3, %s997_s26  ;;  %p1001_p6 = scmp.lt.u32.totalorder %s997_s26, %s1247_s3 }
 0x11e   :  { %p1003_p7 = pnand %p1001_p6, %p998_p5 }
 0x120   :  { %1006 = shalt.err (!%p1003_p7)
}
 0x121   :  { %s1010_s4 = smov 128   ;;  %s1011_s5 = smov 8  }
 0x122   :  { %777 = dma.vmem_to_hbm [thread:$0]  %s772_s2, 8192, %s1247_s3, [#allocation3], %s1010_s4, %s1010_s4, %s1011_s5  }
 0x123   :  { %1007 = dma.done.wait [#allocation3], 8192  }
 0x124   :  { %1008 = vsyncadd [#allocation3], 4294959104 }
 0x125   :  { %781 = vsyncpa [#allocation3], 1 }

</bundles_post_ra>
